<compile_context>
chip_gen: v5e
topology: v5e:2x2
jax: 0.10.0
libtpu: 0.0.40
codegen_flags: <defaults>
</compile_context>

<pallas_src>
import math
from functools import partial

import jax
import jax.numpy as jnp
from jax.experimental import pallas as pl
from jax.experimental.pallas import tpu as pltpu


# ----------------------------------------------------------------------------
# Buffer setup (plain JAX glue) -- mirrors the torch __init__ exactly.
# ----------------------------------------------------------------------------
def build_pe(d_model, height=128, width=128, dtype=jnp.float32):
    if d_model % 4 != 0:
        raise ValueError(
            "Cannot use sin/cos positional encoding with odd dimension "
            f"(got dim={d_model})"
        )
    d2 = d_model // 2
    div_term = jnp.exp(jnp.arange(0.0, d2, 2.0) * -(math.log(10000.0) / d2))
    pos_w = jnp.arange(0.0, width)[:, None]    # (W, 1)
    pos_h = jnp.arange(0.0, height)[:, None]   # (H, 1)

    sin_w = jnp.sin(pos_w * div_term).T[:, None, :]   # (d2//2, 1, W)
    cos_w = jnp.cos(pos_w * div_term).T[:, None, :]
    sin_h = jnp.sin(pos_h * div_term).T[:, :, None]   # (d2//2, H, 1)
    cos_h = jnp.cos(pos_h * div_term).T[:, :, None]

    n = d2 // 2
    pe = jnp.zeros((d_model, height, width), dtype)
    pe = pe.at[0:d2:2].set(jnp.broadcast_to(sin_w, (n, height, width)).astype(dtype))
    pe = pe.at[1:d2:2].set(jnp.broadcast_to(cos_w, (n, height, width)).astype(dtype))
    pe = pe.at[d2::2].set(jnp.broadcast_to(sin_h, (n, height, width)).astype(dtype))
    pe = pe.at[d2 + 1::2].set(jnp.broadcast_to(cos_h, (n, height, width)).astype(dtype))
    return pe


def build_pe_slab(pe, seq_len):
    """(seq_len, d_model) slab, exactly the slicing done in the torch forward."""
    d_model = pe.shape[0]
    w = 4
    h = seq_len // w
    odd = seq_len - h * w
    pe1 = pe[:, :h, :w].reshape(d_model, h * w)   # (D, 4h)
    pe2 = pe[:, h, :odd].reshape(d_model, odd)    # (D, odd)
    return jnp.concatenate([pe1, pe2], axis=1).T  # (S, D)


# ----------------------------------------------------------------------------
# Pallas kernel: PE add (broadcast over batch on the lane axis) + dropout.
# ----------------------------------------------------------------------------
def _hash_u32(x):
    # Two multiplies, one xor-shift (~4 VALU ops/elem): enough avalanche for a
    # dropout mask without making bf16 training VALU-bound on v6e/v7x.
    x = x * jnp.uint32(0xCC9E2D51)
    return (x ^ (x >> 16)) * jnp.uint32(0x85EBCA6B)


def _pe_add_dropout_kernel(seed_ref, x_ref, pe_ref, o_ref, *,
                           keep_threshold, inv_keep, training):
    # x_ref / o_ref: (block_rows, batch*d_model)   pe_ref: (block_rows, d_model)
    block_rows, width = x_ref.shape
    d_model = pe_ref.shape[1]
    batch = width // d_model

    pe = pe_ref[...]
    if batch > 1:
        pe = jnp.tile(pe, (1, batch))          # VMEM-only broadcast over batch
    y = x_ref[...] + pe                        # native dtype (bf16 stays bf16)

    if training:
        # Stateless counter hash keyed on the *global* element index: exact
        # keep probability, reproducible across tilings.  The row term is
        # computed on a (block_rows, 1) column so the only full-width integer
        # work is one add, the 4-op hash, a shift, a compare and a select.
        # (Indices wrap mod 2^32 for tensors above 4G elements -- statistically
        # harmless but no longer globally unique at that scale.)
        seed = seed_ref[0].astype(jnp.uint32)
        row0 = (pl.program_id(0) * block_rows).astype(jnp.uint32)
        rows = jax.lax.broadcasted_iota(jnp.int32, (block_rows, 1), 0)
        row_term = ((rows.astype(jnp.uint32) + row0) * jnp.uint32(width)
                    + seed * jnp.uint32(0x9E3779B1))
        cols = jax.lax.broadcasted_iota(jnp.int32, (block_rows, width), 1)
        bits = _hash_u32(row_term + cols.astype(jnp.uint32))
        r = (bits >> 1).astype(jnp.int32)              # 31 uniform bits, >= 0
        keep = r >= keep_threshold                     # exact P(keep) = 1 - p
        y = jnp.where(keep, y * inv_keep, jnp.zeros_like(y))

    o_ref[...] = y.astype(o_ref.dtype)


# ----------------------------------------------------------------------------
# Wrapper
# ----------------------------------------------------------------------------
def _auto_block_s(seq_len, row_width, itemsize, training):
    """Rows per grid step: sized for pipeline depth, not VMEM fill.

    ~2 MiB I/O blocks (1 MiB in training mode, leaving room for the int32 mask
    temporaries) already sit at ~85% of the HBM roofline; smaller blocks mean
    more grid steps whose input DMA / compute / output writeback overlap.
    When the sequence is long enough we keep >= 4 steps (pipeline depth and
    >= 2 steps per v7x TensorCore); tensors that already fit one small block
    stay a single step, since splitting them on single-TC v5e/v6e only adds
    the ~0.35 us/step grid overhead.
    """
    sublane = max(8, 32 // itemsize)                 # f32: 8, bf16: 16, int8: 32
    target_bytes = (1 if training else 2) * 1024 * 1024
    bytes_per_row = max(row_width * itemsize, 1)
    bs = max(target_bytes // bytes_per_row, 1)
    bs = min(bs, seq_len)
    if seq_len >= 4 * sublane:
        bs = min(bs, pl.cdiv(seq_len, 4))            # >= 4 pipeline steps
    if bs < seq_len:
        bs = max((bs // sublane) * sublane, min(sublane, seq_len))
    return int(bs)


def _vmem_limit_bytes():
    # Never request all of physical VMEM (v7x has only 64 MiB per TensorCore):
    # take 3/4 of capacity, capped at 64 MiB (v5e/v6e have 128 MiB).
    try:
        cap = int(pltpu.get_tpu_info().vmem_capacity_bytes)
    except Exception:
        cap = 0
    if cap > 0:
        return int(min(64 * 1024 * 1024, (cap * 3) // 4))
    return 48 * 1024 * 1024


def positional_encoding_2d_apply(x, pe_slab, *, p=0.1, training=False,
                                 seed=0, block_s=None, x_buffers=None):
    """x: (S, B, D); pe_slab: (S, D) from build_pe_slab. Returns (S, B, D)."""
    S, B, D = x.shape
    assert pe_slab.shape == (S, D), (pe_slab.shape, (S, D))
    pe_slab = pe_slab.astype(x.dtype)

    # Lane alignment: pad d_model up to a multiple of 128 so the in-kernel pe
    # tile, every lane slice and the output stores are vreg-aligned (unmasked
    # vst).  No-op (and zero extra HBM traffic) when d_model % 128 == 0.
    pad_d = (-D) % 128
    if pad_d:
        x = jnp.pad(x, ((0, 0), (0, 0), (0, pad_d)))
        pe_slab = jnp.pad(pe_slab, ((0, 0), (0, pad_d)))
    Dp = D + pad_d
    row_width = B * Dp
    x2 = x.reshape(S, row_width)               # free, row-major reshape

    itemsize = jnp.dtype(x.dtype).itemsize
    p = float(p)
    do_dropout = bool(training) and p > 0.0
    if block_s is None:
        block_s = _auto_block_s(S, row_width, itemsize, do_dropout)
    grid = (pl.cdiv(S, block_s),)

    keep_threshold = min(int(round(p * (1 << 31))), (1 << 31) - 1)
    inv_keep = 1.0 / (1.0 - p) if p < 1.0 else 0.0

    kernel = partial(
        _pe_add_dropout_kernel,
        keep_threshold=keep_threshold, inv_keep=inv_keep, training=do_dropout)

    seed_arr = jnp.asarray([seed], dtype=jnp.int32)

    x_index_map = lambda i, seed_ref: (i, 0)
    if x_buffers is None:
        x_spec = pl.BlockSpec((block_s, row_width), x_index_map)
    else:
        # Optional deeper input buffering (useful on v5e/v6e if a profile
        # shows exposed input DMA; skip on v7x unless VMEM headroom confirmed).
        x_spec = pl.BlockSpec((block_s, row_width), x_index_map,
                              pipeline_mode=pl.Buffered(int(x_buffers)))

    out2 = pl.pallas_call(
        kernel,
        out_shape=jax.ShapeDtypeStruct((S, row_width), x.dtype),
        grid_spec=pltpu.PrefetchScalarGridSpec(
            num_scalar_prefetch=1,
            grid=grid,
            in_specs=[
                x_spec,
                pl.BlockSpec((block_s, Dp), lambda i, seed_ref: (i, 0)),
            ],
            out_specs=pl.BlockSpec((block_s, row_width),
                                   lambda i, seed_ref: (i, 0)),
        ),
        compiler_params=pltpu.CompilerParams(
            dimension_semantics=("parallel",),
            vmem_limit_bytes=_vmem_limit_bytes(),
        ),
    )(seed_arr, x2, pe_slab)

    out = out2.reshape(S, B, Dp)
    if pad_d:
        out = out[:, :, :D]
    return out


class PositionalEncoding2d:
    """JAX/Pallas port of the torch module; the (S, D) PE slab is cached per
    (seq_len, dtype) so the pe slicing/transpose is not redone every forward."""

    def __init__(self, d_model, dropout=0.1, height=128, width=128,
                 dtype=jnp.float32):
        self.p = float(dropout)
        self.pe = build_pe(d_model, height=height, width=width, dtype=dtype)
        self._slab_cache = {}

    def _slab(self, seq_len, dtype):
        key = (int(seq_len), jnp.dtype(dtype).name)
        if key not in self._slab_cache:
            self._slab_cache[key] = build_pe_slab(self.pe, seq_len).astype(dtype)
        return self._slab_cache[key]

    def __call__(self, x, *, training=False, seed=0, block_s=None,
                 x_buffers=None):
        slab = self._slab(x.shape[0], x.dtype)
        return positional_encoding_2d_apply(
            x, slab, p=self.p, training=training, seed=seed,
            block_s=block_s, x_buffers=x_buffers)


# ----------------------------------------------------------------------------
# Demo / self-check
# ----------------------------------------------------------------------------
if __name__ == "__main__":
    # seq=10 exercises the "odd" branch of the torch forward (h=2, odd=2);
    # d_model=128 keeps the lane axis dense; batch=2.
    S, B, D = 10, 2, 128
    H = W = 16

    key = jax.random.PRNGKey(0)
    x = jax.random.normal(key, (S, B, D), dtype=jnp.float32)

    module = PositionalEncoding2d(D, dropout=0.1, height=H, width=W)

    # Pure-JAX reference of the same forward (eval mode).
    slab = build_pe_slab(module.pe, S)                 # (S, D)
    ref = x + slab[:, None, :]

    # --- eval mode (dropout = identity), auto block size --------------------
    out = jax.block_until_ready(module(x, training=False))
    assert out.shape == (S, B, D) and out.dtype == x.dtype
    assert jnp.allclose(out, ref, atol=1e-6, rtol=1e-6), "eval mismatch"

    # --- eval mode, explicit tiling (grid of 2 incl. a partial tail block) --
    out_tiled = jax.block_until_ready(module(x, training=False, block_s=8))
    assert jnp.allclose(out_tiled, ref, atol=1e-6, rtol=1e-6), "tiled mismatch"

    # --- bf16 path: native-dtype add in the kernel (no f32 upcast) ----------
    out_bf16 = jax.block_until_ready(module(x.astype(jnp.bfloat16),
                                            training=False))
    assert out_bf16.dtype == jnp.bfloat16
    assert jnp.allclose(out_bf16.astype(jnp.float32), ref, atol=5e-2, rtol=5e-2)

    # --- d_model not a multiple of 128: wrapper pads lanes, slices back -----
    D2, B2 = 64, 3
    module2 = PositionalEncoding2d(D2, dropout=0.1, height=H, width=W)
    x2 = jax.random.normal(jax.random.PRNGKey(1), (S, B2, D2), dtype=jnp.float32)
    ref2 = x2 + build_pe_slab(module2.pe, S)[:, None, :]
    out2 = jax.block_until_ready(module2(x2, training=False))
    assert out2.shape == (S, B2, D2)
    assert jnp.allclose(out2, ref2, atol=1e-6, rtol=1e-6), "padded-D mismatch"

    # --- training mode: integer-threshold inverted dropout ------------------
    p = module.p
    out_train = jax.block_until_ready(module(x, training=True, seed=123))
    kept = ref / (1.0 - p)
    is_zero = out_train == 0.0
    is_kept = jnp.isclose(out_train, kept, atol=1e-5, rtol=1e-5)
    assert bool(jnp.all(is_zero | is_kept)), "dropout output not in {0, y/(1-p)}"
    drop_frac = float(jnp.mean(is_zero.astype(jnp.float32)))
    assert 0.02 < drop_frac < 0.30, f"unexpected drop fraction {drop_frac}"

    # mask is a function of global indices -> invariant to the tiling choice
    out_train2 = jax.block_until_ready(
        module(x, training=True, seed=123, block_s=8))
    assert jnp.allclose(out_train, out_train2, atol=1e-6, rtol=1e-6)

    print("KERNEL_OK")
</pallas_src>

<mosaic_0001>
module attributes {stable_mosaic.version = 11 : i64} {
  func.func @_pe_add_dropout_kernel(%arg0: i32, %arg1: memref<1xi32, #tpu.memory_space<smem>>, %arg2: memref<10x256xf32, #tpu.memory_space<vmem>>, %arg3: memref<10x128xf32, #tpu.memory_space<vmem>>, %arg4: memref<10x256xf32, #tpu.memory_space<vmem>>) attributes {dimension_semantics = [#tpu.dimension_semantics<parallel>], iteration_bounds = array<i64: 1>, scalar_prefetch = 1 : i64, scratch_operands = 0 : i64, tpu.core_type = #tpu.core_type<tc>, window_params = [{transform_indices = @transform_0, window_bounds = array<i64: 10, 256>}, {transform_indices = @transform_1, window_bounds = array<i64: 10, 128>}, {transform_indices = @transform_2, window_bounds = array<i64: 10, 256>}]} {
    %c0 = arith.constant 0 : index
    %c0_0 = arith.constant 0 : index
    %0 = vector.load %arg3[%c0, %c0_0] : memref<10x128xf32, #tpu.memory_space<vmem>>, vector<10x128xf32>
    %1 = tpu.concatenate %0, %0 in 1 : vector<10x128xf32>, vector<10x128xf32> -> vector<10x256xf32>
    %c0_1 = arith.constant 0 : index
    %c0_2 = arith.constant 0 : index
    %2 = vector.load %arg2[%c0_1, %c0_2] : memref<10x256xf32, #tpu.memory_space<vmem>>, vector<10x256xf32>
    %3 = arith.addf %2, %1 : vector<10x256xf32>
    %c0_3 = arith.constant 0 : index
    %c0_4 = arith.constant 0 : index
    %4 = vector.load %arg4[%c0_3, %c0_4] : memref<10x256xf32, #tpu.memory_space<vmem>>, vector<10x256xf32>
    tpu.vector_store %arg4[%c0_3, %c0_4], %3 {strides = array<i32>} : memref<10x256xf32, #tpu.memory_space<vmem>>, vector<10x256xf32>,
    return
  }
  func.func @transform_0(%arg0: i32, %arg1: memref<1xi32, #tpu.memory_space<smem>>) -> (i32, i32) {
    %c0_i32 = arith.constant 0 : i32
    %c0_i32_0 = arith.constant 0 : i32
    return %arg0, %c0_i32 : i32, i32
  }
  func.func @transform_1(%arg0: i32, %arg1: memref<1xi32, #tpu.memory_space<smem>>) -> (i32, i32) {
    %c0_i32 = arith.constant 0 : i32
    %c0_i32_0 = arith.constant 0 : i32
    return %arg0, %c0_i32 : i32, i32
  }
  func.func @transform_2(%arg0: i32, %arg1: memref<1xi32, #tpu.memory_space<smem>>) -> (i32, i32) {
    %c0_i32 = arith.constant 0 : i32
    %c0_i32_0 = arith.constant 0 : i32
    return %arg0, %c0_i32 : i32, i32
  }
}

</mosaic_0001>

<bundles_post_ra>
// kernel: tpu_custom_call.1
= control target key start
LH: loop header
LB: loop body
LE: loop exit
PB: predicated region body
PF: predicated region fallthrough
CT: control target
= control target key end

     0   :  { %9 = vsyncpa [#allocation5], 0  ;;  %s207_s0 = inlined_call_operand.<no memory space> [shape: s32[1], index: 0, kind: input, shape index: {}]   ;;  %s208_s1 = inlined_call_operand.hbm [shape: f32[10,256], index: 1, kind: input, shape index: {}]   ;;  %s209_s2 = inlined_call_operand.hbm [shape: f32[10,128], index: 2, kind: input, shape index: {}]   ;;  %s210_s3 = inlined_call_operand.hbm [shape: f32[10,256], index: 3, kind: output, shape index: {}]  }
   0x1   :  { %10 = vsyncpa [#allocation8], 0 }
   0x2   :  { %11 = vsyncpa [#allocation6], 0  ;;  %s16_s14 = sshll.u32 %s208_s1, 4  ;;  %s165_s15 = smov [#allocation4]   ;;  %s17_s14 = int_to_ptr.hbm [resolvable:$true] %s16_s14 }
   0x3   :  { %s18_s16 = sshll.u32 %s165_s15, 4  ;;  %s29_s18 = sshll.u32 %s209_s2, 4  ;;  %s19_s16 = int_to_ptr.vmem [resolvable:$true] %s18_s16  ;;  %s30_s18 = int_to_ptr.hbm [resolvable:$true] %s29_s18 }
   0x4   :  { %s166_s19 = smov 256   ;;  %s167_s20 = smov 16  }
   0x5   :  { %24 = dma.hbm_to_vmem [thread:$0]  %s17_s14, 512, %s19_s16, [#allocation5], %s166_s19, %s166_s19, %s167_s20  }
   0x6   :  { %s168_s21 = smov [#allocation7]   ;;  %s169_s23 = smov 128  }
   0x7   :  { %s31_s22 = sshll.u32 %s168_s21, 4  ;;  %s170_s1 = smov 8   ;;  %s32_s22 = int_to_ptr.vmem [resolvable:$true] %s31_s22 }
   0x8   :  { %37 = dma.hbm_to_vmem [thread:$0]  %s30_s18, 256, %s32_s22, [#allocation8], %s169_s23, %s169_s23, %s170_s1  }
   0x9   :  { %159 = dma.done.wait [#allocation5], 512  }
   0xa   :  { %160 = vsyncadd [#allocation5], 4294966784 }
   0xb   :  { %161 = dma.done.wait [#allocation8], 256  }
   0xc   :  { %162 = vsyncadd [#allocation8], 4294967040  ;;  %v46_v0 = vld [vmem:[#allocation7] sm:$0xff]  ;;  %v49_v2 = vld [vmem:[#allocation4 + $0x8] sm:$0xff]  ;;  %s171_s2 = smov [#allocation9]   ;;  %s66_s27 = sshll.u32 %s210_s3, 4  ;;  %s67_s27 = int_to_ptr.hbm [resolvable:$true] %s66_s27 }
   0xd   :  { %v48_v1 = vld [vmem:[#allocation4] sm:$0xff]  ;;  %s64_s24 = sshll.u32 %s171_s2, 4  ;;  %v53_v4 = vadd.f32 %v49_v2, %v46_v0  ;;  %v47_v5 = vld [vmem:[#allocation7 + $0x8] sm:$0x3]  ;;  %v50_v6 = vld [vmem:[#allocation4 + $0x10] sm:$0x3]  ;;  %s65_s24 = int_to_ptr.vmem [resolvable:$true] %s64_s24 }
   0xe   :  { %v52_v3 = vadd.f32 %v48_v1, %v46_v0  ;;  %v51_v7 = vld [vmem:[#allocation4 + $0x18] sm:$0x3]  ;;  %v54_v8 = vadd.f32 %v50_v6, %v47_v5 }
   0xf   :  { %v55_v9 = vadd.f32 %v51_v7, %v47_v5  ;;  %57 = vst [vmem:[#allocation9 + $0x8] sm:$0xff] %v53_v4 }
  0x10   :  { %56 = vst [vmem:[#allocation9] sm:$0xff] %v52_v3 }
  0x11   :  { %58 = vst [vmem:[#allocation9 + $0x10] sm:$0x3] %v54_v8 }
  0x12   :  { %59 = vst [vmem:[#allocation9 + $0x18] sm:$0x3] %v55_v9 }
  0x13   :  { %72 = dma.vmem_to_hbm [thread:$0]  %s65_s24, 512, %s67_s27, [#allocation6], %s166_s19, %s166_s19, %s167_s20  }
  0x14   :  { %163 = dma.done.wait [#allocation6], 512  }
  0x15   :  { %164 = vsyncadd [#allocation6], 4294966784 }
  0x16   :  { %77 = vsyncpa [#allocation5], 1 }
  0x17   :  { %78 = vsyncpa [#allocation8], 1 }
  0x18   :  { %79 = vsyncpa [#allocation6], 1 }

</bundles_post_ra>
